<compile_context>
chip_gen: v7x
topology: tpu7x:2x2x1
jax: 0.10.0
libtpu: 0.0.40
codegen_flags: <defaults>
</compile_context>

<pallas_src>
import functools

import jax
import jax.numpy as jnp
from jax import lax
from jax.experimental import pallas as pl
from jax.experimental.pallas import tpu as pltpu

_HIDDEN_PAD = 128        # hidden widths 25/35/20 zero-padded to one full lane tile
_BLOCK_M_CAP = 4096      # max batch rows per grid step
_SINGLE_TILE_MAX = 1024  # below this, run the whole batch in one grid step


def _round_up(a: int, b: int) -> int:
    return (a + b - 1) // b * b


def ff_kernel(x_ref,
              w1_ref, b1_ref,
              w2_ref, b2_ref,
              w3_ref, b3_ref,
              w4_ref, b4_ref,
              o_ref):
    """All four layers fused; activations are feature-major (features, batch)."""
    x = x_ref[...]                                                    # (bm, KP) bf16
    # Layer 1: contract both operands on their last axis (A @ B^T) so the result
    # is feature-major (H, bm) with the batch on the 128-lane axis.
    h = lax.dot_general(w1_ref[...], x, (((1,), (1,)), ((), ())),
                        preferred_element_type=jnp.float32)           # (H, bm) f32
    h = jnp.maximum(h + b1_ref[...], 0.0).astype(jnp.bfloat16)
    h = jnp.dot(w2_ref[...], h, preferred_element_type=jnp.float32)   # (H, bm) f32
    h = jnp.maximum(h + b2_ref[...], 0.0).astype(jnp.bfloat16)
    h = jnp.dot(w3_ref[...], h, preferred_element_type=jnp.float32)   # (H, bm) f32
    h = jnp.maximum(h + b3_ref[...], 0.0)                             # keep f32
    # Final Linear(20 -> 1): VPU multiply + sublane reduce (a width-1 MXU matmul
    # wastes 127/128 of the array).  Result is a lane-dense (1, bm) row.
    y = jnp.sum(h * w4_ref[...], axis=0, keepdims=True) + b4_ref[...]
    o_ref[...] = y.astype(o_ref.dtype)


@functools.partial(jax.jit, static_argnames=("block_m",))
def torch_ff_forward(x, params, *, block_m=None):
    """Pallas equivalent of TorchFF.forward: params(X).squeeze(-1)."""
    (w1, b1), (w2, b2), (w3, b3), (w4, b4) = params
    M, in_dim = x.shape
    out_dim = w4.shape[0]
    # TODO(synk): epilogue is specialized to output_dim == 1 (the squeeze(-1) case).
    assert out_dim == 1, "kernel epilogue assumes output_dim == 1"

    H = _HIDDEN_PAD
    KP = _round_up(in_dim, 8)        # contraction dim: 8-alignment only (not 128)

    # --- batch tiling --------------------------------------------------------
    Mp0 = _round_up(M, 128)          # output lanes / x sublanes must be 128-aligned
    if block_m is None:
        if Mp0 <= _SINGLE_TILE_MAX:
            block_m = Mp0                                     # single grid step
        else:
            # >=2 tiles so the "parallel" axis can shard across v7x's 2 TCs.
            tiles = max(2, pl.cdiv(Mp0, _BLOCK_M_CAP))
            block_m = _round_up(pl.cdiv(Mp0, tiles), 128)
    else:
        block_m = _round_up(block_m, 128)
    num_tiles = pl.cdiv(M, block_m)
    Mp = num_tiles * block_m

    # --- padding / layout plumbing (outside the kernel) ----------------------
    f32, bf16 = jnp.float32, jnp.bfloat16
    xp = jnp.pad(x.astype(bf16), ((0, Mp - M), (0, KP - in_dim)))     # (Mp, KP)

    def pad_w(w, rows, cols, dtype):      # zero-pad (out, in) weight, cast dtype
        return jnp.pad(w.astype(dtype),
                       ((0, rows - w.shape[0]), (0, cols - w.shape[1])))

    def pad_col(v, rows):                 # zero-pad a vector to an (rows, 1) f32 column
        v = v.astype(f32).reshape(-1, 1)
        return jnp.pad(v, ((0, rows - v.shape[0]), (0, 0)))

    w1p = pad_w(w1, H, KP, bf16)
    w2p = pad_w(w2, H, H, bf16)
    w3p = pad_w(w3, H, H, bf16)
    b1c, b2c, b3c = pad_col(b1, H), pad_col(b2, H), pad_col(b3, H)
    w4c = pad_col(w4.reshape(-1), H)      # (H, 1) f32 column, VPU epilogue
    b4c = b4.astype(f32).reshape(1, 1)

    # Grid-constant params: whole-array, resident in VMEM, no double buffering.
    resident = [pl.BlockSpec(memory_space=pltpu.MemorySpace.VMEM) for _ in range(8)]

    # Honest estimate of what the kernel actually moves / computes (padded dims).
    flops = 2 * Mp * (H * KP + 2 * H * H + H)
    bytes_accessed = (2 * Mp * KP            # x streamed, bf16
                      + 4 * Mp               # output row, f32
                      + 2 * (H * KP + 2 * H * H)   # bf16 weights (read once)
                      + 4 * (4 * H + 1))     # f32 bias columns + w4 column + b4

    out = pl.pallas_call(
        ff_kernel,
        out_shape=jax.ShapeDtypeStruct((1, Mp), f32),
        grid_spec=pltpu.PrefetchScalarGridSpec(
            num_scalar_prefetch=0,
            grid=(num_tiles,),
            in_specs=[pl.BlockSpec((block_m, KP), lambda i: (i, 0))] + resident,
            out_specs=pl.BlockSpec((1, block_m), lambda i: (0, i)),
        ),
        compiler_params=pltpu.CompilerParams(
            dimension_semantics=("parallel",),
            vmem_limit_bytes=32 * 1024 * 1024),
        cost_estimate=pl.CostEstimate(
            flops=flops, transcendentals=0, bytes_accessed=bytes_accessed),
    )(xp, w1p, b1c, w2p, b2c, w3p, b3c, w4c, b4c)

    return out[0, :M]        # == torch's .squeeze(-1) of the (M, 1) output


def init_params(key, input_dim, output_dim, dtype=jnp.float32):
    """torch.nn.Linear-style params: weight (out, in), bias (out,), U(+-1/sqrt(fan_in))."""
    dims = [(input_dim, 25), (25, 35), (35, 20), (20, output_dim)]
    params = []
    for fan_in, fan_out in dims:
        key, kw, kb = jax.random.split(key, 3)
        bound = 1.0 / (fan_in ** 0.5)
        w = jax.random.uniform(kw, (fan_out, fan_in), dtype, -bound, bound)
        b = jax.random.uniform(kb, (fan_out,), dtype, -bound, bound)
        params.append((w, b))
    return tuple(params)


def reference_forward(x, params):
    h = x
    for li, (w, b) in enumerate(params):
        h = h @ w.T + b
        if li < 3:
            h = jnp.maximum(h, 0.0)
    return jnp.squeeze(h, axis=-1)


if __name__ == "__main__":
    key = jax.random.PRNGKey(0)
    input_dim, output_dim = 32, 1
    batch = 16

    kx, kp = jax.random.split(key)
    x = jax.random.normal(kx, (batch, input_dim), jnp.float32)
    params = init_params(kp, input_dim, output_dim)

    y = jax.block_until_ready(torch_ff_forward(x, params))

    y_ref = reference_forward(x, params)
    assert y.shape == (batch,), y.shape
    # bf16 matmul inputs (f32 accumulation) -> relaxed tolerance vs f32 reference.
    assert jnp.allclose(y, y_ref, atol=5e-2, rtol=5e-2), "mismatch vs reference"

    print("KERNEL_OK")
</pallas_src>

<mosaic_0001>
module attributes {stable_mosaic.version = 11 : i64} {
  func.func @ff_kernel(%arg0: i32, %arg1: memref<128x32xbf16, #tpu.memory_space<vmem>>, %arg2: memref<128x32xbf16, #tpu.memory_space<vmem>>, %arg3: memref<128x1xf32, #tpu.memory_space<vmem>>, %arg4: memref<128x128xbf16, #tpu.memory_space<vmem>>, %arg5: memref<128x1xf32, #tpu.memory_space<vmem>>, %arg6: memref<128x128xbf16, #tpu.memory_space<vmem>>, %arg7: memref<128x1xf32, #tpu.memory_space<vmem>>, %arg8: memref<128x1xf32, #tpu.memory_space<vmem>>, %arg9: memref<1x1xf32, #tpu.memory_space<vmem>>, %arg10: memref<1x128xf32, #tpu.memory_space<vmem>>) attributes {dimension_semantics = [#tpu.dimension_semantics<parallel>], iteration_bounds = array<i64: 1>, scalar_prefetch = 0 : i64, scratch_operands = 0 : i64, tpu.core_type = #tpu.core_type<tc>, window_params = [{transform_indices = @transform_0, window_bounds = array<i64: 128, 32>}, {pipeline_mode = #tpu.pipeline_mode<synchronous>, transform_indices = @transform_1, window_bounds = array<i64: 128, 32>}, {pipeline_mode = #tpu.pipeline_mode<synchronous>, transform_indices = @transform_2, window_bounds = array<i64: 128, 1>}, {pipeline_mode = #tpu.pipeline_mode<synchronous>, transform_indices = @transform_3, window_bounds = array<i64: 128, 128>}, {pipeline_mode = #tpu.pipeline_mode<synchronous>, transform_indices = @transform_4, window_bounds = array<i64: 128, 1>}, {pipeline_mode = #tpu.pipeline_mode<synchronous>, transform_indices = @transform_5, window_bounds = array<i64: 128, 128>}, {pipeline_mode = #tpu.pipeline_mode<synchronous>, transform_indices = @transform_6, window_bounds = array<i64: 128, 1>}, {pipeline_mode = #tpu.pipeline_mode<synchronous>, transform_indices = @transform_7, window_bounds = array<i64: 128, 1>}, {pipeline_mode = #tpu.pipeline_mode<synchronous>, transform_indices = @transform_8, window_bounds = array<i64: 1, 1>}, {transform_indices = @transform_9, window_bounds = array<i64: 1, 128>}]} {
    %c0 = arith.constant 0 : index
    %c0_0 = arith.constant 0 : index
    %0 = vector.load %arg1[%c0, %c0_0] : memref<128x32xbf16, #tpu.memory_space<vmem>>, vector<128x32xbf16>
    %c0_1 = arith.constant 0 : index
    %c0_2 = arith.constant 0 : index
    %1 = vector.load %arg2[%c0_1, %c0_2] : memref<128x32xbf16, #tpu.memory_space<vmem>>, vector<128x32xbf16>
    %cst = arith.constant dense<0.000000e+00> : vector<128x128xf32>
    %2 = tpu.matmul %1, %0, %cst {dimension_numbers = #tpu.dot_dimension_numbers<[1], [1], [0], [0], [0, 0, 1, 0], [], []>} : vector<128x32xbf16>, vector<128x32xbf16>, vector<128x128xf32> -> vector<128x128xf32>
    %c0_3 = arith.constant 0 : index
    %c0_4 = arith.constant 0 : index
    %3 = vector.load %arg3[%c0_3, %c0_4] : memref<128x1xf32, #tpu.memory_space<vmem>>, vector<128x1xf32>
    %4 = vector.broadcast %3 : vector<128x1xf32> to vector<128x128xf32>
    %5 = arith.addf %2, %4 : vector<128x128xf32>
    %cst_5 = arith.constant 0.000000e+00 : f32
    %6 = vector.broadcast %cst_5 : f32 to vector<128x128xf32>
    %7 = arith.maximumf %5, %6 : vector<128x128xf32>
    %8 = arith.truncf %7 : vector<128x128xf32> to vector<128x128xbf16>
    %c0_6 = arith.constant 0 : index
    %c0_7 = arith.constant 0 : index
    %9 = vector.load %arg4[%c0_6, %c0_7] : memref<128x128xbf16, #tpu.memory_space<vmem>>, vector<128x128xbf16>
    %cst_8 = arith.constant dense<0.000000e+00> : vector<128x128xf32>
    %10 = tpu.matmul %9, %8, %cst_8 {dimension_numbers = #tpu.dot_dimension_numbers<[1], [0], [0], [1], [0, 0, 1, 1], [], []>} : vector<128x128xbf16>, vector<128x128xbf16>, vector<128x128xf32> -> vector<128x128xf32>
    %c0_9 = arith.constant 0 : index
    %c0_10 = arith.constant 0 : index
    %11 = vector.load %arg5[%c0_9, %c0_10] : memref<128x1xf32, #tpu.memory_space<vmem>>, vector<128x1xf32>
    %12 = vector.broadcast %11 : vector<128x1xf32> to vector<128x128xf32>
    %13 = arith.addf %10, %12 : vector<128x128xf32>
    %cst_11 = arith.constant 0.000000e+00 : f32
    %14 = vector.broadcast %cst_11 : f32 to vector<128x128xf32>
    %15 = arith.maximumf %13, %14 : vector<128x128xf32>
    %16 = arith.truncf %15 : vector<128x128xf32> to vector<128x128xbf16>
    %c0_12 = arith.constant 0 : index
    %c0_13 = arith.constant 0 : index
    %17 = vector.load %arg6[%c0_12, %c0_13] : memref<128x128xbf16, #tpu.memory_space<vmem>>, vector<128x128xbf16>
    %cst_14 = arith.constant dense<0.000000e+00> : vector<128x128xf32>
    %18 = tpu.matmul %17, %16, %cst_14 {dimension_numbers = #tpu.dot_dimension_numbers<[1], [0], [0], [1], [0, 0, 1, 1], [], []>} : vector<128x128xbf16>, vector<128x128xbf16>, vector<128x128xf32> -> vector<128x128xf32>
    %c0_15 = arith.constant 0 : index
    %c0_16 = arith.constant 0 : index
    %19 = vector.load %arg7[%c0_15, %c0_16] : memref<128x1xf32, #tpu.memory_space<vmem>>, vector<128x1xf32>
    %20 = vector.broadcast %19 : vector<128x1xf32> to vector<128x128xf32>
    %21 = arith.addf %18, %20 : vector<128x128xf32>
    %cst_17 = arith.constant 0.000000e+00 : f32
    %22 = vector.broadcast %cst_17 : f32 to vector<128x128xf32>
    %23 = arith.maximumf %21, %22 : vector<128x128xf32>
    %c0_18 = arith.constant 0 : index
    %c0_19 = arith.constant 0 : index
    %24 = vector.load %arg8[%c0_18, %c0_19] : memref<128x1xf32, #tpu.memory_space<vmem>>, vector<128x1xf32>
    %25 = vector.broadcast %24 : vector<128x1xf32> to vector<128x128xf32>
    %26 = arith.mulf %23, %25 : vector<128x128xf32>
    %cst_20 = arith.constant dense<0.000000e+00> : vector<128xf32>
    %27 = vector.multi_reduction <add>, %26, %cst_20 [0] : vector<128x128xf32> to vector<128xf32>
    %28 = vector.shape_cast %27 : vector<128xf32> to vector<1x128xf32>
    %c0_21 = arith.constant 0 : index
    %c0_22 = arith.constant 0 : index
    %29 = vector.load %arg9[%c0_21, %c0_22] : memref<1x1xf32, #tpu.memory_space<vmem>>, vector<1x1xf32>
    %30 = vector.broadcast %29 : vector<1x1xf32> to vector<1x128xf32>
    %31 = arith.addf %28, %30 : vector<1x128xf32>
    %c0_23 = arith.constant 0 : index
    %c0_24 = arith.constant 0 : index
    %32 = vector.load %arg10[%c0_23, %c0_24] : memref<1x128xf32, #tpu.memory_space<vmem>>, vector<1x128xf32>
    tpu.vector_store %arg10[%c0_23, %c0_24], %31 {strides = array<i32>} : memref<1x128xf32, #tpu.memory_space<vmem>>, vector<1x128xf32>,
    return
  }
  func.func @transform_0(%arg0: i32) -> (i32, i32) {
    %c0_i32 = arith.constant 0 : i32
    %c0_i32_0 = arith.constant 0 : i32
    return %arg0, %c0_i32 : i32, i32
  }
  func.func @transform_1(%arg0: i32) -> (i32, i32) {
    %c0_i32 = arith.constant 0 : i32
    %c0_i32_0 = arith.constant 0 : i32
    %c0_i32_1 = arith.constant 0 : i32
    return %c0_i32, %c0_i32_0 : i32, i32
  }
  func.func @transform_2(%arg0: i32) -> (i32, i32) {
    %c0_i32 = arith.constant 0 : i32
    %c0_i32_0 = arith.constant 0 : i32
    %c0_i32_1 = arith.constant 0 : i32
    return %c0_i32, %c0_i32_0 : i32, i32
  }
  func.func @transform_3(%arg0: i32) -> (i32, i32) {
    %c0_i32 = arith.constant 0 : i32
    %c0_i32_0 = arith.constant 0 : i32
    %c0_i32_1 = arith.constant 0 : i32
    return %c0_i32, %c0_i32_0 : i32, i32
  }
  func.func @transform_4(%arg0: i32) -> (i32, i32) {
    %c0_i32 = arith.constant 0 : i32
    %c0_i32_0 = arith.constant 0 : i32
    %c0_i32_1 = arith.constant 0 : i32
    return %c0_i32, %c0_i32_0 : i32, i32
  }
  func.func @transform_5(%arg0: i32) -> (i32, i32) {
    %c0_i32 = arith.constant 0 : i32
    %c0_i32_0 = arith.constant 0 : i32
    %c0_i32_1 = arith.constant 0 : i32
    return %c0_i32, %c0_i32_0 : i32, i32
  }
  func.func @transform_6(%arg0: i32) -> (i32, i32) {
    %c0_i32 = arith.constant 0 : i32
    %c0_i32_0 = arith.constant 0 : i32
    %c0_i32_1 = arith.constant 0 : i32
    return %c0_i32, %c0_i32_0 : i32, i32
  }
  func.func @transform_7(%arg0: i32) -> (i32, i32) {
    %c0_i32 = arith.constant 0 : i32
    %c0_i32_0 = arith.constant 0 : i32
    %c0_i32_1 = arith.constant 0 : i32
    return %c0_i32, %c0_i32_0 : i32, i32
  }
  func.func @transform_8(%arg0: i32) -> (i32, i32) {
    %c0_i32 = arith.constant 0 : i32
    %c0_i32_0 = arith.constant 0 : i32
    %c0_i32_1 = arith.constant 0 : i32
    return %c0_i32, %c0_i32_0 : i32, i32
  }
  func.func @transform_9(%arg0: i32) -> (i32, i32) {
    %c0_i32 = arith.constant 0 : i32
    %c0_i32_0 = arith.constant 0 : i32
    return %c0_i32, %arg0 : i32, i32
  }
}

</mosaic_0001>

<bundles_post_ra>
// kernel: torch_ff_forward.1
= control target key start
LH: loop header
LB: loop body
LE: loop exit
PB: predicated region body
PF: predicated region fallthrough
CT: control target
= control target key end

     0   :  { %vm243_vm0 = vcmask 261120   ;;  %v1343_v1 = vmov 0   ;;  %s1712_s0 = inlined_call_operand.vmem [shape: bf16[128,32], index: 0, kind: input, shape index: {}]   ;;  %s1713_s2 = inlined_call_operand.vmem [shape: f32[128,1], index: 2, kind: input, shape index: {}]   ;;  %s1714_s8 = inlined_call_operand.<no memory space> [shape: f32[1,1], index: 8, kind: input, shape index: {}]   ;;  %s1715_s1 = inlined_call_operand.vmem [shape: bf16[128,32], index: 1, kind: input, shape index: {}]   ;;  %s1716_s4 = inlined_call_operand.vmem [shape: f32[128,1], index: 4, kind: input, shape index: {}]   ;;  %s1717_s6 = inlined_call_operand.vmem [shape: f32[128,1], index: 6, kind: input, shape index: {}]   ;;  %s1718_s7 = inlined_call_operand.vmem [shape: f32[128,1], index: 7, kind: input, shape index: {}]   ;;  %s1719_s3 = inlined_call_operand.vmem [shape: bf16[128,128], index: 3, kind: input, shape index: {}]   ;;  %s1720_s5 = inlined_call_operand.vmem [shape: bf16[128,128], index: 5, kind: input, shape index: {}]   ;;  %s1721_s9 = inlined_call_operand.vmem [shape: f32[1,128], index: 9, kind: output, shape index: {}]  }
   0x1   :  { %v1311_v0 = vld [vmem:[%s1712_s0] sm:$0xff]   ;;  %1309 = vset.pattern.permute.xlu0 %v1343_v1  ;;  %1310 = vset.pattern.permute.xlu1 %v1343_v1  ;;  %v1312_v2 = vld [vmem:[%s1712_s0 + $0x8] sm:$0xff]   ;;  %v69_v5 = vld [vmem:[%s1713_s2 + $0x10] sm:$0xff]  ;;  %v14_v6 = vstv %s1714_s8 }
   0x2   :  { %1300 = vmatprep.subr.msk.bf16.mxu0 %vm243_vm0, %v1311_v0  ;;  %v269_v3 = vsel %vm243_vm0, %v1311_v0, 0  ;;  %v67_v4 = vld [vmem:[%s1713_s2] sm:$0xff]  ;;  %v68_v7 = vld [vmem:[%s1713_s2 + $0x8] sm:$0xff]  ;;  %95 = vperm.xlu1 %1310, %v69_v5   ;;  %15 = vst [vmem:[#allocation2] sm:$0x1] %v14_v6  ;;  %v70_v8 = vld [vmem:[%s1713_s2 + $0x18] sm:$0xff] }
   0x3   :  { %1205 = vmatpush3.bf16.xpose.msra.mxu0 %v269_v3  ;;  %85 = vperm.xlu0 %1309, %v67_v4   ;;  %v272_v9 = vsel %vm243_vm0, %v1312_v2, 0  ;;  %v1313_v10 = vld [vmem:[%s1712_s0 + $0x10] sm:$0xff]   ;;  %v71_v11 = vld [vmem:[%s1713_s2 + $0x20] sm:$0xff]  ;;  %v72_v12 = vld [vmem:[%s1713_s2 + $0x28] sm:$0xff] }
   0x4   :  { %1301 = vmatprep.subr.msk.bf16.mxu0 %vm243_vm0, %v1312_v2  ;;  %v73_v13 = vld [vmem:[%s1713_s2 + $0x30] sm:$0xff]  ;;  %v74_v14 = vld [vmem:[%s1713_s2 + $0x38] sm:$0xff]  ;;  %v275_v16 = vsel %vm243_vm0, %v1313_v10, 0  ;;  %v1319_v17 = vld [vmem:[%s1715_s1] sm:$0xff]  }
   0x5   :  { %v1314_v15 = vld [vmem:[%s1712_s0 + $0x18] sm:$0xff]   ;;  %v75_v18 = vld [vmem:[%s1713_s2 + $0x40] sm:$0xff]  ;;  %v76_v19 = vld [vmem:[%s1713_s2 + $0x48] sm:$0xff]  ;;  %1220 = vmatprep.mubr.msk.bf16.mxu0 %vm243_vm0, %v1319_v17 }
   0x6   :  { %100 = vperm.xlu1 %1310, %v70_v8   ;;  %v77_v20 = vld [vmem:[%s1713_s2 + $0x50] sm:$0xff]  ;;  %v78_v21 = vld [vmem:[%s1713_s2 + $0x58] sm:$0xff]  ;;  %v278_v22 = vsel %vm243_vm0, %v1314_v15, 0  ;;  %v1315_v23 = vld [vmem:[%s1712_s0 + $0x20] sm:$0xff]  }
   0x7   :  { %90 = vperm.xlu0 %1309, %v68_v7   ;;  %v79_v24 = vld [vmem:[%s1713_s2 + $0x60] sm:$0xff]  ;;  %v80_v25 = vld [vmem:[%s1713_s2 + $0x68] sm:$0xff]  ;;  %v81_v26 = vld [vmem:[%s1713_s2 + $0x70] sm:$0xff]  ;;  %v281_v28 = vsel %vm243_vm0, %v1315_v23, 0 }
   0x8   :  { %v82_v27 = vld [vmem:[%s1713_s2 + $0x78] sm:$0xff]  ;;  %v1316_v29 = vld [vmem:[%s1712_s0 + $0x28] sm:$0xff]   ;;  %v429_v30 = vld [vmem:[%s1716_s4] sm:$0xff] }
   0x9   :  { %v430_v31 = vld [vmem:[%s1716_s4 + $0x8] sm:$0xff]  ;;  %v431_v32 = vld [vmem:[%s1716_s4 + $0x10] sm:$0xff]  ;;  %v432_v33 = vld [vmem:[%s1716_s4 + $0x18] sm:$0xff]  ;;  %v284_v34 = vsel %vm243_vm0, %v1316_v29, 0 }
   0xa   :  { %110 = vperm.xlu1 %1310, %v72_v12   ;;  %v1317_v35 = vld [vmem:[%s1712_s0 + $0x30] sm:$0xff]   ;;  %v433_v36 = vld [vmem:[%s1716_s4 + $0x20] sm:$0xff]  ;;  %v434_v37 = vld [vmem:[%s1716_s4 + $0x28] sm:$0xff] }
   0xb   :  { %1207 = vmatpush3.bf16.xpose.msra.mxu0 %v272_v9  ;;  %105 = vperm.xlu0 %1309, %v71_v11   ;;  %v435_v38 = vld [vmem:[%s1716_s4 + $0x30] sm:$0xff]  ;;  %v436_v39 = vld [vmem:[%s1716_s4 + $0x38] sm:$0xff]  ;;  %v287_v40 = vsel %vm243_vm0, %v1317_v35, 0  ;;  %v437_v42 = vld [vmem:[%s1716_s4 + $0x40] sm:$0xff] }
   0xc   :  { %1302 = vmatprep.subr.msk.bf16.mxu0 %vm243_vm0, %v1313_v10  ;;  %v1318_v41 = vld [vmem:[%s1712_s0 + $0x38] sm:$0xff]   ;;  %v438_v43 = vld [vmem:[%s1716_s4 + $0x48] sm:$0xff]  ;;  %v439_v44 = vld [vmem:[%s1716_s4 + $0x50] sm:$0xff] }
   0xd   :  { %v440_v45 = vld [vmem:[%s1716_s4 + $0x58] sm:$0xff]  ;;  %v290_v46 = vsel %vm243_vm0, %v1318_v41, 0  ;;  %v441_v47 = vld [vmem:[%s1716_s4 + $0x60] sm:$0xff]  ;;  %v442_v48 = vld [vmem:[%s1716_s4 + $0x68] sm:$0xff] }
   0xe   :  { %120 = vperm.xlu1 %1310, %v74_v14   ;;  %v443_v49 = vld [vmem:[%s1716_s4 + $0x70] sm:$0xff]  ;;  %v1320_v50 = vld [vmem:[%s1715_s1 + $0x8] sm:$0xff]   ;;  %v444_v51 = vld [vmem:[%s1716_s4 + $0x78] sm:$0xff] }
   0xf   :  { %115 = vperm.xlu0 %1309, %v73_v13   ;;  %v1321_v52 = vld [vmem:[%s1715_s1 + $0x10] sm:$0xff]   ;;  %v710_v53 = vld [vmem:[%s1717_s6] sm:$0xff]  ;;  %v711_v54 = vld [vmem:[%s1717_s6 + $0x8] sm:$0xff] }
  0x10   :  { %v712_v55 = vld [vmem:[%s1717_s6 + $0x10] sm:$0xff]  ;;  %v1322_v56 = vld [vmem:[%s1715_s1 + $0x18] sm:$0xff]   ;;  %v1323_v58 = vld [vmem:[%s1715_s1 + $0x20] sm:$0xff]  }
  0x11   :  { %v713_v57 = vld [vmem:[%s1717_s6 + $0x18] sm:$0xff]  ;;  %v714_v59 = vld [vmem:[%s1717_s6 + $0x20] sm:$0xff]  ;;  %v715_v60 = vld [vmem:[%s1717_s6 + $0x28] sm:$0xff] }
  0x12   :  { %130 = vperm.xlu1 %1310, %v76_v19   ;;  %v967_v61 = vld [vmem:[%s1718_s7] sm:$0xff]  ;;  %v1324_v62 = vld [vmem:[%s1715_s1 + $0x28] sm:$0xff]   ;;  %v1325_v0 = vld [vmem:[%s1715_s1 + $0x30] sm:$0xff]  }
  0x13   :  { %1209 = vmatpush3.bf16.xpose.msra.mxu0 %v275_v16  ;;  %125 = vperm.xlu0 %1309, %v75_v18   ;;  %v968_v63 = vld [vmem:[%s1718_s7 + $0x8] sm:$0xff]  ;;  %v969_v1 = vld [vmem:[%s1718_s7 + $0x10] sm:$0xff]  ;;  %v970_v2 = vld [vmem:[%s1718_s7 + $0x18] sm:$0xff] }
  0x14   :  { %1303 = vmatprep.subr.msk.bf16.mxu0 %vm243_vm0, %v1314_v15  ;;  %v716_v3 = vld [vmem:[%s1717_s6 + $0x30] sm:$0xff]  ;;  %v1326_v4 = vld [vmem:[%s1715_s1 + $0x38] sm:$0xff]   ;;  %v971_v5 = vld [vmem:[%s1718_s7 + $0x20] sm:$0xff] }
  0x15   :  { %v717_v6 = vld [vmem:[%s1717_s6 + $0x38] sm:$0xff]  ;;  %v972_v7 = vld [vmem:[%s1718_s7 + $0x28] sm:$0xff]  ;;  %v718_v8 = vld [vmem:[%s1717_s6 + $0x40] sm:$0xff] }
  0x16   :  { %140 = vperm.xlu1 %1310, %v78_v21   ;;  %v973_v9 = vld [vmem:[%s1718_s7 + $0x30] sm:$0xff]  ;;  %v719_v10 = vld [vmem:[%s1717_s6 + $0x48] sm:$0xff]  ;;  %v974_v11 = vld [vmem:[%s1718_s7 + $0x38] sm:$0xff] }
  0x17   :  { %135 = vperm.xlu0 %1309, %v77_v20   ;;  %v720_v12 = vld [vmem:[%s1717_s6 + $0x50] sm:$0xff]  ;;  %v975_v13 = vld [vmem:[%s1718_s7 + $0x40] sm:$0xff]  ;;  %v721_v14 = vld [vmem:[%s1717_s6 + $0x58] sm:$0xff] }
  0x18   :  { %v976_v15 = vld [vmem:[%s1718_s7 + $0x48] sm:$0xff]  ;;  %v722_v16 = vld [vmem:[%s1717_s6 + $0x60] sm:$0xff]  ;;  %v977_v17 = vld [vmem:[%s1718_s7 + $0x50] sm:$0xff] }
  0x19   :  { %v723_v18 = vld [vmem:[%s1717_s6 + $0x68] sm:$0xff]  ;;  %v978_v19 = vld [vmem:[%s1718_s7 + $0x58] sm:$0xff]  ;;  %v724_v20 = vld [vmem:[%s1717_s6 + $0x70] sm:$0xff] }
  0x1a   :  { %150 = vperm.xlu1 %1310, %v80_v25   ;;  %v979_v21 = vld [vmem:[%s1718_s7 + $0x60] sm:$0xff]  ;;  %v982_v25 = vld [vmem:[%s1718_s7 + $0x78] sm:$0xff] }
  0x1b   :  { %1211 = vmatpush3.bf16.xpose.msra.mxu0 %v278_v22  ;;  %145 = vperm.xlu0 %1309, %v79_v24   ;;  %v725_v22 = vld [vmem:[%s1717_s6 + $0x78] sm:$0xff]  ;;  %v981_v24 = vld [vmem:[%s1718_s7 + $0x70] sm:$0xff] }
  0x1c   :  { %1304 = vmatprep.subr.msk.bf16.mxu0 %vm243_vm0, %v1315_v23  ;;  %v980_v23 = vld [vmem:[%s1718_s7 + $0x68] sm:$0xff] }
  0x1e   :  { %160 = vperm.xlu1 %1310, %v82_v27   ;;  %v1327_v27 = vld [vmem:[%s1719_s3] sm:$0xff]  }
  0x1f   :  { %155 = vperm.xlu0 %1309, %v81_v26   ;;  %v1100_v26 = vld [vmem:[#allocation2] sm:$0x1]  ;;  %1252 = vmatprep.mubr.bf16.mxu1 %v1327_v27 }
  0x22   :  { %452 = vperm.xlu1 %1310, %v430_v31  }
  0x23   :  { %1213 = vmatpush3.bf16.xpose.msra.mxu0 %v281_v28  ;;  %447 = vperm.xlu0 %1309, %v429_v30  }
  0x24   :  { %1305 = vmatprep.subr.msk.bf16.mxu0 %vm243_vm0, %v1316_v29 }
  0x26   :  { %462 = vperm.xlu1 %1310, %v432_v33  }
  0x27   :  { %457 = vperm.xlu0 %1309, %v431_v32  }
  0x2a   :  { %472 = vperm.xlu1 %1310, %v434_v37  }
  0x2b   :  { %1215 = vmatpush3.bf16.xpose.msra.mxu0 %v284_v34  ;;  %467 = vperm.xlu0 %1309, %v433_v36  }
  0x2c   :  { %1306 = vmatprep.subr.msk.bf16.mxu0 %vm243_vm0, %v1317_v35 }
  0x2e   :  { %482 = vperm.xlu1 %1310, %v436_v39  }
  0x2f   :  { %477 = vperm.xlu0 %1309, %v435_v38  }
  0x32   :  { %492 = vperm.xlu1 %1310, %v438_v43  }
  0x33   :  { %1217 = vmatpush3.bf16.xpose.msra.mxu0 %v287_v40  ;;  %487 = vperm.xlu0 %1309, %v437_v42  }
  0x34   :  { %1307 = vmatprep.subr.msk.bf16.mxu0 %vm243_vm0, %v1318_v41 }
  0x36   :  { %502 = vperm.xlu1 %1310, %v440_v45  }
  0x37   :  { %497 = vperm.xlu0 %1309, %v439_v44  }
  0x3a   :  { %512 = vperm.xlu1 %1310, %v442_v48  }
  0x3b   :  { %1219 = vmatpush3.bf16.xpose.msra.mxu0 %v290_v46  ;;  %507 = vperm.xlu0 %1309, %v441_v47  }
  0x3e   :  { %522 = vperm.xlu1 %1310, %v444_v51  }
  0x3f   :  { %517 = vperm.xlu0 %1309, %v443_v49  }
  0x42   :  { %1221 = vmatmul.mubr.msk.bf16.vlgmr.msra.gmra.mrb[0].mxu0 %vm243_vm0, %v1320_v50  ;;  %733 = vperm.xlu1 %1310, %v711_v54  }
  0x43   :  { %1224 = vmatprep.mubr.msk.bf16.mxu0 %vm243_vm0, %v1321_v52  ;;  %728 = vperm.xlu0 %1309, %v710_v53  }
  0x46   :  { %743 = vperm.xlu1 %1310, %v713_v57  }
  0x47   :  { %738 = vperm.xlu0 %1309, %v712_v55  }
  0x4a   :  { %1225 = vmatmul.mubr.msk.bf16.gmra.mrb[4].mxu0 %vm243_vm0, %v1322_v56  ;;  %753 = vperm.xlu1 %1310, %v715_v60  }
  0x4b   :  { %1228 = vmatprep.mubr.msk.bf16.mxu0 %vm243_vm0, %v1323_v58  ;;  %748 = vperm.xlu0 %1309, %v714_v59  }
  0x4e   :  { %990 = vperm.xlu1 %1310, %v968_v63  }
  0x4f   :  { %985 = vperm.xlu0 %1309, %v967_v61  }
  0x52   :  { %1229 = vmatmul.mubr.msk.bf16.gmra.mrb[8].mxu0 %vm243_vm0, %v1324_v62  ;;  %1000 = vperm.xlu1 %1310, %v970_v2  }
  0x53   :  { %1232 = vmatprep.mubr.msk.bf16.mxu0 %vm243_vm0, %v1325_v0  ;;  %995 = vperm.xlu0 %1309, %v969_v1  }
  0x56   :  { %1005 = vperm.xlu1 %1310, %v971_v5  }
  0x57   :  { %758 = vperm.xlu0 %1309, %v716_v3  }
  0x5a   :  { %1233 = vmatmul.mubr.msk.bf16.gmra.mrb[12].mxu0 %vm243_vm0, %v1326_v4  ;;  %1010 = vperm.xlu1 %1310, %v972_v7  }
  0x5b   :  { %763 = vperm.xlu0 %1309, %v717_v6  }
  0x5e   :  { %1015 = vperm.xlu1 %1310, %v973_v9  }
  0x5f   :  { %768 = vperm.xlu0 %1309, %v718_v8  }
  0x62   :  { %1020 = vperm.xlu1 %1310, %v974_v11  }
  0x63   :  { %773 = vperm.xlu0 %1309, %v719_v10  }
  0x66   :  { %1025 = vperm.xlu1 %1310, %v975_v13  }
  0x67   :  { %778 = vperm.xlu0 %1309, %v720_v12  }
  0x6a   :  { %1030 = vperm.xlu1 %1310, %v976_v15  }
  0x6b   :  { %783 = vperm.xlu0 %1309, %v721_v14  }
  0x6e   :  { %1035 = vperm.xlu1 %1310, %v977_v17  }
  0x6f   :  { %788 = vperm.xlu0 %1309, %v722_v16  }
  0x72   :  { %1040 = vperm.xlu1 %1310, %v978_v19  }
  0x73   :  { %793 = vperm.xlu0 %1309, %v723_v18  }
  0x76   :  { %1045 = vperm.xlu1 %1310, %v979_v21  }
  0x77   :  { %798 = vperm.xlu0 %1309, %v724_v20  }
  0x7a   :  { %1050 = vperm.xlu1 %1310, %v980_v23  }
  0x7b   :  { %803 = vperm.xlu0 %1309, %v725_v22  }
  0x7e   :  { %1060 = vperm.xlu1 %1310, %v982_v25  }
  0x7f   :  { %1055 = vperm.xlu0 %1309, %v981_v24  }
  0x81   :  { %v96_v29 = vpop.permute.xlu1 %95 }
  0x82   :  { %v86_v28 = vpop.permute.xlu0 %85 }
  0x83   :  { %1103 = vperm.xlu0 %1309, %v1100_v26  }
  0x85   :  { %v101_v31 = vpop.permute.xlu1 %100 }
  0x86   :  { %v91_v30 = vpop.permute.xlu0 %90 }
  0x89   :  { %v111_v33 = vpop.permute.xlu1 %110 }
  0x8a   :  { %v106_v32 = vpop.permute.xlu0 %105 }
  0x8d   :  { %v121_v38 = vpop.permute.xlu1 %120 }
  0x8e   :  { %v116_v34 = vpop.permute.xlu0 %115 }
  0x91   :  { %v131_v50 = vpop.permute.xlu1 %130 }
  0x92   :  { %v126_v46 = vpop.permute.xlu0 %125 }
  0x95   :  { %v141_v63 = vpop.permute.xlu1 %140 }
  0x96   :  { %v136_v59 = vpop.permute.xlu0 %135 }
  0x99   :  { %v151_v12 = vpop.permute.xlu1 %150 }
  0x9a   :  { %v146_v7 = vpop.permute.xlu0 %145 }
  0x9d   :  { %v161_v24 = vpop.permute.xlu1 %160 }
  0x9e   :  { %v156_v19 = vpop.permute.xlu0 %155 }
 0x115   :  { %v1222_v35 = vpop.f32.mrb[0].mxu0 }
 0x116   :  { %v335_v36 = vadd.f32 %v1222_v35, %v96_v29  ;;  %v326_v37 = vpop.f32.mrb[1].mxu0 }
 0x117   :  { %v327_v39 = vadd.f32 %v326_v37, %v86_v28  ;;  %v1223_v40 = vpop.f32.mrb[2].mxu0  ;;  %v1329_v37 = vld [vmem:[%s1719_s3 + $0x10] sm:$0xff]  }
 0x118   :  { %v338_v41 = vadd.f32 %v1223_v40, %v101_v31  ;;  %v329_v42 = vpop.f32.mrb[3].mxu0  ;;  %v391_v44 = vmax.f32 %v335_v36, 0.0  ;;  %v1328_v36 = vld [vmem:[%s1719_s3 + $0x8] sm:$0xff]  }
 0x119   :  { %v330_v43 = vadd.f32 %v329_v42, %v91_v30  ;;  %v389_v47 = vmax.f32 %v327_v39, 0.0  ;;  %v1331_v39 = vld [vmem:[%s1719_s3 + $0x20] sm:$0xff]   ;;  %v1332_v40 = vld [vmem:[%s1719_s3 + $0x28] sm:$0xff]   ;;  %v1334_v42 = vld [vmem:[%s1719_s3 + $0x38] sm:$0xff]  }
 0x11a   :  { %v392_v45 = vmax.f32 %v338_v41, 0.0  ;;  %v1333_v41 = vld [vmem:[%s1719_s3 + $0x30] sm:$0xff]  }
 0x11b   :  { %v390_v48 = vmax.f32 %v330_v43, 0.0  ;;  %v1335_v43 = vld [vmem:[%s1720_s5] sm:$0xff]  }
 0x11c   :  { %v406_v49 = vpack.c.bf16 %v392_v45, %v391_v44  ;;  %v448_v44 = vpop.permute.xlu0 %447  ;;  %v453_v45 = vpop.permute.xlu1 %452 }
 0x11d   :  { %v1226_v51 = vpop.f32.mrb[4].mxu0  ;;  %v405_v52 = vpack.c.bf16 %v390_v48, %v389_v47 }
 0x11e   :  { %v351_v53 = vadd.f32 %v1226_v51, %v116_v34  ;;  %v342_v54 = vpop.f32.mrb[5].mxu0 }
 0x11f   :  { %v343_v55 = vadd.f32 %v342_v54, %v106_v32  ;;  %v1227_v56 = vpop.f32.mrb[6].mxu0  ;;  %1236 = vmatprep.subr.bf16.mxu1 %v405_v52 }
 0x120   :  { %v354_v57 = vadd.f32 %v1227_v56, %v121_v38  ;;  %v345_v58 = vpop.f32.mrb[7].mxu0  ;;  %1237 = vmatpush3.bf16.msra.mxu1 %v405_v52  ;;  %v395_v61 = vmax.f32 %v351_v53, 0.0  ;;  %v1330_v38 = vld [vmem:[%s1719_s3 + $0x18] sm:$0xff]   ;;  %v463_v47 = vpop.permute.xlu1 %462 }
 0x121   :  { %v346_v60 = vadd.f32 %v345_v58, %v111_v33  ;;  %1238 = vmatprep.subr.bf16.mxu1 %v406_v49  ;;  %v393_v0 = vmax.f32 %v343_v55, 0.0 }
 0x122   :  { %v396_v62 = vmax.f32 %v354_v57, 0.0 }
 0x123   :  { %v394_v1 = vmax.f32 %v346_v60, 0.0 }
 0x124   :  { %v408_v2 = vpack.c.bf16 %v396_v62, %v395_v61  ;;  %1239 = vmatpush3.bf16.msra.mxu1 %v406_v49  ;;  %v473_v49 = vpop.permute.xlu1 %472 }
 0x125   :  { %v407_v3 = vpack.c.bf16 %v394_v1, %v393_v0  ;;  %v1230_v4 = vpop.f32.mrb[8].mxu0 }
 0x126   :  { %v367_v5 = vadd.f32 %v1230_v4, %v136_v59  ;;  %v358_v6 = vpop.f32.mrb[9].mxu0 }
 0x127   :  { %v359_v8 = vadd.f32 %v358_v6, %v126_v46  ;;  %v1231_v9 = vpop.f32.mrb[10].mxu0  ;;  %1240 = vmatprep.subr.bf16.mxu1 %v407_v3  ;;  %v458_v46 = vpop.permute.xlu0 %457 }
 0x128   :  { %v370_v10 = vadd.f32 %v1231_v9, %v141_v63  ;;  %v361_v11 = vpop.f32.mrb[11].mxu0  ;;  %1241 = vmatpush3.bf16.msra.mxu1 %v407_v3  ;;  %v399_v14 = vmax.f32 %v367_v5, 0.0  ;;  %v483_v54 = vpop.permute.xlu1 %482 }
 0x129   :  { %v362_v13 = vadd.f32 %v361_v11, %v131_v50  ;;  %1242 = vmatprep.subr.bf16.mxu1 %v408_v2  ;;  %v397_v16 = vmax.f32 %v359_v8, 0.0 }
 0x12a   :  { %v400_v15 = vmax.f32 %v370_v10, 0.0 }
 0x12b   :  { %v398_v17 = vmax.f32 %v362_v13, 0.0  ;;  %v468_v48 = vpop.permute.xlu0 %467 }
 0x12c   :  { %v410_v18 = vpack.c.bf16 %v400_v15, %v399_v14  ;;  %1243 = vmatpush3.bf16.msra.mxu1 %v408_v2  ;;  %v493_v2 = vpop.permute.xlu1 %492 }
 0x12d   :  { %v409_v20 = vpack.c.bf16 %v398_v17, %v397_v16  ;;  %v1234_v21 = vpop.f32.mrb[12].mxu0 }
 0x12e   :  { %v383_v22 = vadd.f32 %v1234_v21, %v156_v19  ;;  %v374_v23 = vpop.f32.mrb[13].mxu0 }
 0x12f   :  { %v375_v25 = vadd.f32 %v374_v23, %v146_v7  ;;  %v1235_v26 = vpop.f32.mrb[14].mxu0  ;;  %1244 = vmatprep.subr.bf16.mxu1 %v409_v20  ;;  %v478_v50 = vpop.permute.xlu0 %477 }
 0x130   :  { %v386_v27 = vadd.f32 %v1235_v26, %v161_v24  ;;  %v377_v28 = vpop.f32.mrb[15].mxu0  ;;  %1245 = vmatpush3.bf16.msra.mxu1 %v409_v20  ;;  %v403_v30 = vmax.f32 %v383_v22, 0.0  ;;  %v503_v15 = vpop.permute.xlu1 %502 }
 0x131   :  { %v378_v29 = vadd.f32 %v377_v28, %v151_v12  ;;  %1246 = vmatprep.subr.bf16.mxu1 %v410_v18  ;;  %v401_v32 = vmax.f32 %v375_v25, 0.0 }
 0x132   :  { %v404_v31 = vmax.f32 %v386_v27, 0.0 }
 0x133   :  { %v402_v33 = vmax.f32 %v378_v29, 0.0  ;;  %v488_v62 = vpop.permute.xlu0 %487 }
 0x134   :  { %v412_v34 = vpack.c.bf16 %v404_v31, %v403_v30  ;;  %1247 = vmatpush3.bf16.msra.mxu1 %v410_v18  ;;  %v513_v28 = vpop.permute.xlu1 %512 }
 0x135   :  { %v411_v35 = vpack.c.bf16 %v402_v33, %v401_v32 }
 0x137   :  { %1248 = vmatprep.subr.bf16.mxu1 %v411_v35  ;;  %v498_v11 = vpop.permute.xlu0 %497 }
 0x138   :  { %1249 = vmatpush3.bf16.msra.mxu1 %v411_v35 }
 0x139   :  { %1250 = vmatprep.subr.bf16.mxu1 %v412_v34 }
 0x13b   :  { %v508_v23 = vpop.permute.xlu0 %507 }
 0x13c   :  { %1251 = vmatpush3.bf16.msra.mxu1 %v412_v34 }
 0x13f   :  { %1253 = vmatmul.mubr.bf16.vlgmr.msra.gmra.mrb[0].mxu1 %v1328_v36  ;;  %v518_v35 = vpop.permute.xlu0 %517 }
 0x140   :  { %1256 = vmatprep.mubr.bf16.mxu1 %v1329_v37 }
 0x147   :  { %1257 = vmatmul.mubr.bf16.gmra.mrb[4].mxu1 %v1330_v38 }
 0x148   :  { %1260 = vmatprep.mubr.bf16.mxu1 %v1331_v39 }
 0x14f   :  { %1261 = vmatmul.mubr.bf16.gmra.mrb[8].mxu1 %v1332_v40  ;;  %v523_v40 = vpop.permute.xlu1 %522 }
 0x150   :  { %1264 = vmatprep.mubr.bf16.mxu1 %v1333_v41 }
 0x157   :  { %1265 = vmatmul.mubr.bf16.gmra.mrb[12].mxu1 %v1334_v42 }
 0x158   :  { %1284 = vmatprep.mubr.bf16.mxu1 %v1335_v43 }
 0x212   :  { %v1254_v51 = vpop.f32.mrb[0].mxu1 }
 0x213   :  { %v616_v52 = vadd.f32 %v1254_v51, %v458_v46  ;;  %v607_v53 = vpop.f32.mrb[1].mxu1 }
 0x214   :  { %v608_v55 = vadd.f32 %v607_v53, %v448_v44  ;;  %v1255_v56 = vpop.f32.mrb[2].mxu1  ;;  %v1337_v53 = vld [vmem:[%s1720_s5 + $0x10] sm:$0xff]  }
 0x215   :  { %v619_v57 = vadd.f32 %v1255_v56, %v463_v47  ;;  %v610_v58 = vpop.f32.mrb[3].mxu1  ;;  %v672_v60 = vmax.f32 %v616_v52, 0.0  ;;  %v1336_v52 = vld [vmem:[%s1720_s5 + $0x8] sm:$0xff]  }
 0x216   :  { %v611_v59 = vadd.f32 %v610_v58, %v453_v45  ;;  %v670_v63 = vmax.f32 %v608_v55, 0.0  ;;  %v1339_v55 = vld [vmem:[%s1720_s5 + $0x20] sm:$0xff]   ;;  %v1340_v56 = vld [vmem:[%s1720_s5 + $0x28] sm:$0xff]   ;;  %v1342_v58 = vld [vmem:[%s1720_s5 + $0x38] sm:$0xff]  }
 0x217   :  { %v673_v61 = vmax.f32 %v619_v57, 0.0  ;;  %v1341_v57 = vld [vmem:[%s1720_s5 + $0x30] sm:$0xff]  }
 0x218   :  { %v671_v0 = vmax.f32 %v611_v59, 0.0  ;;  %v729_v59 = vpop.permute.xlu0 %728 }
 0x219   :  { %v687_v1 = vpack.c.bf16 %v673_v61, %v672_v60  ;;  %v734_v60 = vpop.permute.xlu1 %733 }
 0x21a   :  { %v686_v3 = vpack.c.bf16 %v671_v0, %v670_v63  ;;  %v1258_v4 = vpop.f32.mrb[4].mxu1 }
 0x21b   :  { %v632_v5 = vadd.f32 %v1258_v4, %v478_v50  ;;  %v623_v6 = vpop.f32.mrb[5].mxu1 }
 0x21c   :  { %v624_v7 = vadd.f32 %v623_v6, %v468_v48  ;;  %v1259_v8 = vpop.f32.mrb[6].mxu1  ;;  %1268 = vmatprep.subr.bf16.mxu1 %v686_v3  ;;  %v739_v61 = vpop.permute.xlu0 %738 }
 0x21d   :  { %v635_v9 = vadd.f32 %v1259_v8, %v483_v54  ;;  %v626_v10 = vpop.f32.mrb[7].mxu1  ;;  %1269 = vmatpush3.bf16.msra.mxu1 %v686_v3  ;;  %v676_v13 = vmax.f32 %v632_v5, 0.0  ;;  %v1338_v54 = vld [vmem:[%s1720_s5 + $0x18] sm:$0xff]  }
 0x21e   :  { %v627_v12 = vadd.f32 %v626_v10, %v473_v49  ;;  %1270 = vmatprep.subr.bf16.mxu1 %v687_v1  ;;  %v674_v16 = vmax.f32 %v624_v7, 0.0 }
 0x21f   :  { %v677_v14 = vmax.f32 %v635_v9, 0.0 }
 0x220   :  { %v675_v17 = vmax.f32 %v627_v12, 0.0  ;;  %v749_v63 = vpop.permute.xlu0 %748 }
 0x221   :  { %v689_v18 = vpack.c.bf16 %v677_v14, %v676_v13  ;;  %1271 = vmatpush3.bf16.msra.mxu1 %v687_v1 }
 0x222   :  { %v688_v19 = vpack.c.bf16 %v675_v17, %v674_v16  ;;  %v1262_v20 = vpop.f32.mrb[8].mxu1 }
 0x223   :  { %v648_v21 = vadd.f32 %v1262_v20, %v498_v11  ;;  %v639_v22 = vpop.f32.mrb[9].mxu1 }
 0x224   :  { %v640_v24 = vadd.f32 %v639_v22, %v488_v62  ;;  %v1263_v25 = vpop.f32.mrb[10].mxu1  ;;  %1272 = vmatprep.subr.bf16.mxu1 %v688_v19  ;;  %v744_v62 = vpop.permute.xlu1 %743 }
 0x225   :  { %v651_v26 = vadd.f32 %v1263_v25, %v503_v15  ;;  %v642_v27 = vpop.f32.mrb[11].mxu1  ;;  %1273 = vmatpush3.bf16.msra.mxu1 %v688_v19  ;;  %v680_v30 = vmax.f32 %v648_v21, 0.0  ;;  %v986_v1 = vpop.permute.xlu0 %985 }
 0x226   :  { %v643_v29 = vadd.f32 %v642_v27, %v493_v2  ;;  %1274 = vmatprep.subr.bf16.mxu1 %v689_v18  ;;  %v678_v32 = vmax.f32 %v640_v24, 0.0 }
 0x227   :  { %v681_v31 = vmax.f32 %v651_v26, 0.0 }
 0x228   :  { %v679_v33 = vmax.f32 %v643_v29, 0.0  ;;  %v754_v0 = vpop.permute.xlu1 %753 }
 0x229   :  { %v691_v34 = vpack.c.bf16 %v681_v31, %v680_v30  ;;  %1275 = vmatpush3.bf16.msra.mxu1 %v689_v18  ;;  %v996_v3 = vpop.permute.xlu0 %995 }
 0x22a   :  { %v690_v36 = vpack.c.bf16 %v679_v33, %v678_v32  ;;  %v1266_v37 = vpop.f32.mrb[12].mxu1 }
 0x22b   :  { %v664_v38 = vadd.f32 %v1266_v37, %v518_v35  ;;  %v655_v39 = vpop.f32.mrb[13].mxu1 }
 0x22c   :  { %v656_v41 = vadd.f32 %v655_v39, %v508_v23  ;;  %v1267_v42 = vpop.f32.mrb[14].mxu1  ;;  %1276 = vmatprep.subr.bf16.mxu1 %v690_v36  ;;  %v991_v2 = vpop.permute.xlu1 %990 }
 0x22d   :  { %v667_v43 = vadd.f32 %v1267_v42, %v523_v40  ;;  %v658_v44 = vpop.f32.mrb[15].mxu1  ;;  %1277 = vmatpush3.bf16.msra.mxu1 %v690_v36  ;;  %v684_v46 = vmax.f32 %v664_v38, 0.0  ;;  %v759_v5 = vpop.permute.xlu0 %758 }
 0x22e   :  { %v659_v45 = vadd.f32 %v658_v44, %v513_v28  ;;  %1278 = vmatprep.subr.bf16.mxu1 %v691_v34  ;;  %v682_v48 = vmax.f32 %v656_v41, 0.0 }
 0x22f   :  { %v685_v47 = vmax.f32 %v667_v43, 0.0 }
 0x230   :  { %v683_v49 = vmax.f32 %v659_v45, 0.0  ;;  %v1001_v4 = vpop.permute.xlu1 %1000 }
 0x231   :  { %v693_v50 = vpack.c.bf16 %v685_v47, %v684_v46  ;;  %1279 = vmatpush3.bf16.msra.mxu1 %v691_v34  ;;  %v764_v7 = vpop.permute.xlu0 %763 }
 0x232   :  { %v692_v51 = vpack.c.bf16 %v683_v49, %v682_v48 }
 0x234   :  { %1280 = vmatprep.subr.bf16.mxu1 %v692_v51  ;;  %v1006_v6 = vpop.permute.xlu1 %1005 }
 0x235   :  { %1281 = vmatpush3.bf16.msra.mxu1 %v692_v51  ;;  %v769_v9 = vpop.permute.xlu0 %768 }
 0x236   :  { %1282 = vmatprep.subr.bf16.mxu1 %v693_v50 }
 0x238   :  { %v1011_v8 = vpop.permute.xlu1 %1010 }
 0x239   :  { %1283 = vmatpush3.bf16.msra.mxu1 %v693_v50  ;;  %v774_v11 = vpop.permute.xlu0 %773 }
 0x23c   :  { %1285 = vmatmul.mubr.bf16.vlgmr.msra.gmra.mrb[16].mxu1 %v1336_v52  ;;  %v1016_v10 = vpop.permute.xlu1 %1015 }
 0x23d   :  { %1288 = vmatprep.mubr.bf16.mxu1 %v1337_v53  ;;  %v779_v13 = vpop.permute.xlu0 %778 }
 0x240   :  { %v1021_v12 = vpop.permute.xlu1 %1020 }
 0x241   :  { %v784_v20 = vpop.permute.xlu0 %783 }
 0x244   :  { %1289 = vmatmul.mubr.bf16.gmra.mrb[20].mxu1 %v1338_v54  ;;  %v1026_v14 = vpop.permute.xlu1 %1025 }
 0x245   :  { %1292 = vmatprep.mubr.bf16.mxu1 %v1339_v55  ;;  %v789_v32 = vpop.permute.xlu0 %788 }
 0x248   :  { %v1031_v25 = vpop.permute.xlu1 %1030 }
 0x249   :  { %v794_v50 = vpop.permute.xlu0 %793 }
 0x24c   :  { %1293 = vmatmul.mubr.bf16.gmra.mrb[24].mxu1 %v1340_v56  ;;  %v1036_v39 = vpop.permute.xlu1 %1035 }
 0x24d   :  { %1296 = vmatprep.mubr.bf16.mxu1 %v1341_v57 }
 0x250   :  { %v1041_v55 = vpop.permute.xlu1 %1040 }
 0x254   :  { %1297 = vmatmul.mubr.bf16.gmra.mrb[28].mxu1 %v1342_v58 }
 0x30f   :  { %v1286_v15 = vpop.f32.mrb[16].mxu1 }
 0x310   :  { %v888_v16 = vpop.f32.mrb[17].mxu1  ;;  %v897_v17 = vadd.f32 %v1286_v15, %v739_v61 }
 0x311   :  { %v889_v18 = vadd.f32 %v888_v16, %v729_v59  ;;  %v1287_v19 = vpop.f32.mrb[18].mxu1 }
 0x312   :  { %v900_v21 = vadd.f32 %v1287_v19, %v744_v62  ;;  %v891_v22 = vpop.f32.mrb[19].mxu1  ;;  %v953_v26 = vmax.f32 %v897_v17, 0.0 }
 0x313   :  { %v951_v23 = vmax.f32 %v889_v18, 0.0  ;;  %v892_v24 = vadd.f32 %v891_v22, %v734_v60 }
 0x314   :  { %v954_v28 = vmax.f32 %v900_v21, 0.0  ;;  %v1065_v34 = vmul.f32 %v996_v3, %v953_v26 }
 0x315   :  { %v952_v27 = vmax.f32 %v892_v24, 0.0  ;;  %v1063_v29 = vmul.f32 %v986_v1, %v951_v23 }
 0x316   :  { %v1066_v40 = vmul.f32 %v1001_v4, %v954_v28  ;;  %v799_v4 = vpop.permute.xlu0 %798 }
 0x317   :  { %v1064_v30 = vmul.f32 %v991_v2, %v952_v27  ;;  %v1290_v31 = vpop.f32.mrb[20].mxu1 }
 0x318   :  { %v904_v33 = vpop.f32.mrb[21].mxu1  ;;  %v913_v36 = vadd.f32 %v1290_v31, %v759_v5 }
 0x319   :  { %v1079_v35 = vadd.f32 %v1064_v30, %v1063_v29  ;;  %v905_v37 = vadd.f32 %v904_v33, %v749_v63  ;;  %v1291_v38 = vpop.f32.mrb[22].mxu1 }
 0x31a   :  { %v907_v41 = vpop.f32.mrb[23].mxu1  ;;  %v916_v44 = vadd.f32 %v1291_v38, %v764_v7  ;;  %v957_v46 = vmax.f32 %v913_v36, 0.0 }
 0x31b   :  { %v1080_v42 = vadd.f32 %v1079_v35, %v1065_v34  ;;  %v955_v43 = vmax.f32 %v905_v37, 0.0  ;;  %v908_v45 = vadd.f32 %v907_v41, %v754_v0  ;;  %v1106_v41 = vlaneseq }
 0x31c   :  { %v958_v52 = vmax.f32 %v916_v44, 0.0  ;;  %v1069_v57 = vmul.f32 %v1016_v10, %v957_v46 }
 0x31d   :  { %v1067_v47 = vmul.f32 %v1006_v6, %v955_v43  ;;  %v1081_v48 = vadd.f32 %v1080_v42, %v1066_v40  ;;  %v956_v49 = vmax.f32 %v908_v45, 0.0  ;;  %v1107_v44 = vshrl.u32 %v1106_v41, 7 }
 0x31e   :  { %v1070_v1 = vmul.f32 %v1021_v12, %v958_v52  ;;  %v804_v12 = vpop.permute.xlu0 %803 }
 0x31f   :  { %v1082_v51 = vadd.f32 %v1081_v48, %v1067_v47  ;;  %v1068_v53 = vmul.f32 %v1011_v8, %v956_v49  ;;  %v1294_v54 = vpop.f32.mrb[24].mxu1  ;;  %v1046_v8 = vpop.permute.xlu1 %1045  ;;  %v1108_v47 = vsub.s32 0, %v1107_v44 }
 0x320   :  { %v920_v56 = vpop.f32.mrb[25].mxu1  ;;  %v929_v59 = vadd.f32 %v1294_v54, %v779_v13 }
 0x321   :  { %v1083_v58 = vadd.f32 %v1082_v51, %v1068_v53  ;;  %v921_v60 = vadd.f32 %v920_v56, %v769_v9  ;;  %v1295_v61 = vpop.f32.mrb[26].mxu1 }
 0x322   :  { %v932_v62 = vadd.f32 %v1295_v61, %v784_v20  ;;  %v923_v63 = vpop.f32.mrb[27].mxu1  ;;  %v961_v5 = vmax.f32 %v929_v59, 0.0  ;;  %v1056_v36 = vpop.permute.xlu0 %1055 }
 0x323   :  { %v1084_v0 = vadd.f32 %v1083_v58, %v1069_v57  ;;  %v959_v2 = vmax.f32 %v921_v60, 0.0  ;;  %v924_v3 = vadd.f32 %v923_v63, %v774_v11  ;;  %v1051_v28 = vpop.permute.xlu1 %1050 }
 0x324   :  { %v962_v16 = vmax.f32 %v932_v62, 0.0  ;;  %v1073_v13 = vmul.f32 %v1036_v39, %v961_v5 }
 0x325   :  { %v1071_v6 = vmul.f32 %v1026_v14, %v959_v2  ;;  %v1085_v7 = vadd.f32 %v1084_v0, %v1070_v1  ;;  %v960_v15 = vmax.f32 %v924_v3, 0.0 }
 0x326   :  { %v1074_v23 = vmul.f32 %v1041_v55, %v962_v16  ;;  %v1104_v49 = vpop.permute.xlu0 %1103 }
 0x327   :  { %v1086_v17 = vadd.f32 %v1085_v7, %v1071_v6  ;;  %v1072_v18 = vmul.f32 %v1031_v25, %v960_v15  ;;  %v1298_v10 = vpop.f32.mrb[28].mxu1  ;;  %v1109_v51 = vrot.slane %v1104_v49, %v1108_v47 }
 0x328   :  { %v936_v19 = vpop.f32.mrb[29].mxu1  ;;  %v945_v21 = vadd.f32 %v1298_v10, %v799_v4 }
 0x329   :  { %v1087_v9 = vadd.f32 %v1086_v17, %v1072_v18  ;;  %v937_v20 = vadd.f32 %v936_v19, %v789_v32  ;;  %v1299_v22 = vpop.f32.mrb[30].mxu1  ;;  %v1061_v32 = vpop.permute.xlu1 %1060 }
 0x32a   :  { %v939_v24 = vpop.f32.mrb[31].mxu1  ;;  %v948_v27 = vadd.f32 %v1299_v22, %v804_v12  ;;  %v965_v29 = vmax.f32 %v945_v21, 0.0 }
 0x32b   :  { %v1088_v11 = vadd.f32 %v1087_v9, %v1073_v13  ;;  %v963_v26 = vmax.f32 %v937_v20, 0.0  ;;  %v940_v14 = vadd.f32 %v939_v24, %v794_v50 }
 0x32c   :  { %v966_v34 = vmax.f32 %v948_v27, 0.0  ;;  %v1077_v37 = vmul.f32 %v1056_v36, %v965_v29 }
 0x32d   :  { %v1075_v30 = vmul.f32 %v1046_v8, %v963_v26  ;;  %v1089_v31 = vadd.f32 %v1088_v11, %v1074_v23  ;;  %v964_v33 = vmax.f32 %v940_v14, 0.0 }
 0x32e   :  { %v1078_v39 = vmul.f32 %v1061_v32, %v966_v34 }
 0x32f   :  { %v1090_v25 = vadd.f32 %v1089_v31, %v1075_v30  ;;  %v1076_v35 = vmul.f32 %v1051_v28, %v964_v33 }
 0x331   :  { %v1091_v38 = vadd.f32 %v1090_v25, %v1076_v35 }
 0x333   :  { %v1092_v40 = vadd.f32 %v1091_v38, %v1077_v37 }
 0x335   :  { %v1093_v42 = vadd.f32 %v1092_v40, %v1078_v39 }
 0x337   :  { %v1094_v43 = vrot.slane %v1093_v42, 4 }
 0x339   :  { %v1095_v45 = vadd.f32 %v1094_v43, %v1093_v42 }
 0x33b   :  { %v1096_v46 = vrot.slane %v1095_v45, 2 }
 0x33d   :  { %v1097_v48 = vadd.f32 %v1096_v46, %v1095_v45 }
 0x33f   :  { %v1098_v50 = vrot.slane %v1097_v48, 1 }
 0x341   :  { %v1099_v52 = vadd.f32 %v1098_v50, %v1097_v48 }
 0x343   :  { %v1110_v53 = vadd.f32 %v1109_v51, %v1099_v52 }
 0x345   :  { %1111 = vst [vmem:[%s1721_s9] sm:$0x1] %v1110_v53 }

</bundles_post_ra>
